<compile_context>
chip_gen: v5e
topology: v5e:2x2
jax: 0.10.0
libtpu: 0.0.40
codegen_flags: <defaults>
</compile_context>

<pallas_src>
import jax
import jax.numpy as jnp
from jax.experimental import pallas as pl
from jax.experimental.pallas import tpu as pltpu


def _identity_copy_kernel(x_ref, o_ref):
    # Whole-tile copy; BlockSpec pipelining overlaps the DMA of tile i+1 and the
    # writeback of tile i-1 with this store.
    o_ref[...] = x_ref[...]


def _sublane_pack(itemsize):
    # Sub-32-bit dtypes pack along sublanes: f32 -> 8, bf16 -> 16, int8/fp8 -> 32.
    return max(8, 32 // max(1, itemsize))


def _select_tiles(B, D, itemsize, max_tile_bytes):
    """Closed-form, packing-aligned tile selection (no divisor search)."""
    pack = _sublane_pack(itemsize)

    # Lane (last-dim) tile: keep full D when a pack-row strip fits the budget;
    # otherwise use a large multiple of 128 so stores stay unmasked vst.
    if D * itemsize * pack <= max_tile_bytes:
        bd = D
    else:
        bd = max(128, (max_tile_bytes // (pack * itemsize * 128)) * 128)
        bd = min(bd, D)

    # Row tile: largest pack-aligned row count within the per-buffer budget.
    cap_rows = max(pack, ((max_tile_bytes // max(1, bd * itemsize)) // pack) * pack)
    bm = min(cap_rows, B)

    # Prefer >= 2 grid steps so v7x's two TensorCores both drive DMA traffic
    # (neutral on single-TC v5e/v6e).
    if bm >= B and B > pack:
        bm = max(pack, (pl.cdiv(B, 2) // pack) * pack)
    return bm, bd


def identity_copy(x, *, max_tile_bytes=2 * 1024 * 1024):
    """Materialized identity: tiled HBM->VMEM->HBM copy into a fresh buffer."""
    orig_shape = x.shape
    x2 = x.reshape(1, -1) if x.ndim == 1 else x.reshape(-1, x.shape[-1])
    B, D = x2.shape
    itemsize = x2.dtype.itemsize

    bm, bd = _select_tiles(B, D, itemsize, max_tile_bytes)
    grid = (pl.cdiv(B, bm), pl.cdiv(D, bd))  # ragged last blocks are handled by Pallas
    tile_bytes = bm * bd * itemsize

    out = pl.pallas_call(
        _identity_copy_kernel,
        out_shape=jax.ShapeDtypeStruct((B, D), x2.dtype),
        grid_spec=pl.GridSpec(
            grid=grid,
            in_specs=[pl.BlockSpec((bm, bd), lambda i, j: (i, j))],
            out_specs=pl.BlockSpec((bm, bd), lambda i, j: (i, j)),
        ),
        compiler_params=pltpu.CompilerParams(
            dimension_semantics=("parallel", "parallel"),
            # in + out, double-buffered, plus slack — capped well under v7x VMEM.
            vmem_limit_bytes=min(32 * 1024 * 1024, 4 * tile_bytes + (1 << 20)),
        ),
        cost_estimate=pl.CostEstimate(
            flops=0,
            transcendentals=0,
            bytes_accessed=2 * B * D * itemsize,
        ),
    )(x2)
    return out.reshape(orig_shape)


def identity_forward(x, output_features=False, ghost_mask=None, *, materialize=False):
    """Pallas equivalent of IdentityDict.forward.

    Default path returns x directly (zero HBM traffic — the identity needs no
    data movement). Set materialize=True to force a distinct output buffer via
    the Pallas copy kernel. ghost_mask is accepted for signature parity and,
    as in the PyTorch module, unused.
    """
    out = identity_copy(x) if materialize else x
    if output_features:
        return out, out
    return out


def identity_encode(x):
    return x


def identity_decode(f):
    return f


# TODO(synk): from_pretrained / HuggingFace hub loading is host-side I/O with no
# Pallas equivalent; intentionally not implemented.


if __name__ == "__main__":
    key = jax.random.PRNGKey(0)
    k0, k1, k2 = jax.random.split(key, 3)

    batch, activation_dim = 16, 256
    x = jax.random.normal(k0, (batch, activation_dim), jnp.float32)

    # Default (fast) path: forward is a true no-op, zero bytes moved.
    y = identity_forward(x)
    assert y is x
    y2, feats = identity_forward(x, output_features=True)
    assert y2 is x and feats is x

    # Materialized path: Pallas tiled copy (exercises the kernel).
    yc = jax.block_until_ready(identity_forward(x, materialize=True))
    assert yc.shape == x.shape and yc.dtype == x.dtype
    assert jnp.array_equal(yc, x)

    yc2, featsc = identity_forward(x, output_features=True, materialize=True)
    jax.block_until_ready((yc2, featsc))
    assert jnp.array_equal(yc2, x) and jnp.array_equal(featsc, x)

    # Ragged batch + bf16: exercises dtype-aware sublane packing (16) and the
    # cdiv grid / masked last block (20 rows -> 16-row tiles, 2 grid steps).
    xb = jax.random.normal(k1, (20, activation_dim), jnp.float32).astype(jnp.bfloat16)
    yb = jax.block_until_ready(identity_copy(xb))
    assert yb.dtype == jnp.bfloat16 and jnp.array_equal(yb, xb)

    # Wide-row path: force 2-D tiling (lane tile = multiple of 128) with a tiny budget.
    xw = jax.random.normal(k2, (16, 512), jnp.float32)
    yw = jax.block_until_ready(identity_copy(xw, max_tile_bytes=8 * 1024))
    assert jnp.array_equal(yw, xw)

    # encode / decode are the identity as well.
    assert identity_encode(x) is x
    assert identity_decode(x) is x

    print("KERNEL_OK")
</pallas_src>

<mosaic_0001>
module attributes {stable_mosaic.version = 11 : i64} {
  func.func @_identity_copy_kernel(%arg0: i32, %arg1: i32, %arg2: memref<8x256xf32, #tpu.memory_space<vmem>>, %arg3: memref<8x256xf32, #tpu.memory_space<vmem>>) attributes {dimension_semantics = [#tpu.dimension_semantics<parallel>, #tpu.dimension_semantics<parallel>], iteration_bounds = array<i64: 2, 1>, scalar_prefetch = 0 : i64, scratch_operands = 0 : i64, tpu.core_type = #tpu.core_type<tc>, window_params = [{transform_indices = @transform_0, window_bounds = array<i64: 8, 256>}, {transform_indices = @transform_1, window_bounds = array<i64: 8, 256>}]} {
    %c0 = arith.constant 0 : index
    %c0_0 = arith.constant 0 : index
    %0 = vector.load %arg2[%c0, %c0_0] : memref<8x256xf32, #tpu.memory_space<vmem>>, vector<8x256xf32>
    %c0_1 = arith.constant 0 : index
    %c0_2 = arith.constant 0 : index
    %1 = vector.load %arg3[%c0_1, %c0_2] : memref<8x256xf32, #tpu.memory_space<vmem>>, vector<8x256xf32>
    tpu.vector_store %arg3[%c0_1, %c0_2], %0 {strides = array<i32>} : memref<8x256xf32, #tpu.memory_space<vmem>>, vector<8x256xf32>,
    return
  }
  func.func @transform_0(%arg0: i32, %arg1: i32) -> (i32, i32) {
    %c0_i32 = arith.constant 0 : i32
    return %arg0, %arg1 : i32, i32
  }
  func.func @transform_1(%arg0: i32, %arg1: i32) -> (i32, i32) {
    %c0_i32 = arith.constant 0 : i32
    return %arg0, %arg1 : i32, i32
  }
}

</mosaic_0001>

<bundles_post_ra>
// kernel: tpu_custom_call.1
= control target key start
LH: loop header
LB: loop body
LE: loop exit
PB: predicated region body
PF: predicated region fallthrough
CT: control target
= control target key end

     0   :  { %6 = vsyncpa [#allocation3], 0  ;;  %s585_s0 = inlined_call_operand.hbm [shape: f32[16,256], index: 0, kind: input, shape index: {}]   ;;  %s586_s1 = inlined_call_operand.hbm [shape: f32[16,256], index: 1, kind: output, shape index: {}]  }
   0x1   :  { %8 = vsyncpa [#allocation3 + $0x1], 0 }
   0x2   :  { %9 = vsyncpa [#allocation4], 0 }
   0x3   :  { %11 = vsyncpa [#allocation4 + $0x1], 0  ;;  %s465_s6 = smov 0   ;;  %s467_s7 = smov 0  }
   0x4   :  { %s469_s8 = smov 0   ;;  %s471_s9 = smov 0  }
   0x5   :  { %s473_s10 = smov 0   ;;  %s475_s11 = smov 0  }
   0x6 LB: > { %s262_s12 = sadd.s32 4294967295, %s453_s11   ;;  %s263_s13 = sadd.s32 4294967294, %s453_s11   ;;  %s453_s11 = sphi %s475_s11, %s17_s11   ;;  %s449_s10 = sphi %s473_s10, %s595_s10   ;;  %s445_s9 = sphi %s471_s9, %s594_s9   ;;  %s441_s8 = sphi %s469_s8, %s593_s8   ;;  %s437_s7 = sphi %s467_s7, %s592_s7   ;;  %s433_s6 = sphi %s465_s6, %s591_s6  }
   0x7   : > { %s29_s14 = sadd.s32 1, %s449_s10  ;;  %s38_s15 = sadd.s32 1, %s441_s8 }
   0x8   : > { %p31_p0 = scmp.ge.s32.totalorder %s29_s14, 2  ;;  %p45_p1 = scmp.ne.s32.totalorder %s441_s8, %s437_s7 }
   0x9   : > { %p46_p2 = scmp.eq.s32.totalorder %s453_s11, 0  ;;  %p51_p3 = scmp.ne.s32.totalorder %s437_s7, %s433_s6 }
   0xa   : > { %s597_s14 = smov (%p31_p0, %s29_s14), 0  ;;  %p52_p5 = scmp.eq.s32.totalorder %s262_s12, 0 }
   0xb   : > { %p506_p4 = por %p46_p2, %p45_p1  ;;  %s33_s17 = ssub.s32 %s449_s10, %s597_s14 }
   0xc   : > { %p77_p6 = scmp.eq.s32.totalorder %s262_s12, 1  ;;  %p36_p7 = scmp.eq.s32.totalorder %s33_s17, 0 }
   0xd   : > { %p512_p8 = por %p52_p5, %p51_p3  ;;  %p83_p10 = scmp.eq.s32.totalorder %s263_s13, 1 }
   0xe   : > { %p516_p9 = por %p77_p6, %p45_p1  ;;  %p265_p12 = scmp.ge.s32.totalorder %s453_s11, 2 }
   0xf   : > { %s521_s20 = scalar_select %p36_p7, %s441_s8, %s38_s15  }
  0x10   : > { %p523_p11 = por %p83_p10, %p51_p3  ;;  %p291_p13 = scmp.lt.s32.totalorder %s453_s11, 2 }
  0x11   : > { %s103_s22 = sand.u32 1, %s441_s8   ;;  %s277_s24 = sshll.u32 %s449_s10, 4 }
  0x12   : > { %s266_s23 = sshll.u32 %s103_s22, 4  ;;  %s114_s27 = scalar_lea.hbm %s585_s0, %s277_s24 }
  0x13   : > { %s107_s28 = scalar_lea.vmem [#allocation2], %s266_s23  ;;  %s116_s30 = sshll.u32 %s114_s27, 4  ;;  %s117_s30 = int_to_ptr.hbm [resolvable:$true] %s116_s30 }
  0x14   : > { %s118_s29 = sshll.u32 %s107_s28, 4  ;;  %p284_p0 = pnand %p291_p13, %p506_p4  ;;  %s119_s29 = int_to_ptr.vmem [resolvable:$true] %s118_s29 }
  0x15   : > { %p269_p1 = scmp.ge.s32.totalorder %s453_s11, 1  ;;  %p123_p2 = scmp.lt.s32.totalorder %s453_s11, 3 }
  0x16   : > { %s104_s2 = scalar_lea.sflag [#allocation3], %s103_s22 }
  0x17   : > { %286 = dma.hbm_to_vmem [thread:$0]  (!%p284_p0), %s117_s30, 256, %s119_s29, %s104_s2  }
  0x18   : > { %p124_p3 = pnand %p269_p1, %p123_p2 }
  0x19   : > { %s539_s3 = sand.u32 (!%p124_p3), 1, %s437_s7  }
  0x1a   : > { %127 = sbr.rel (%p124_p3) target bundleno = 47 (0x2f), region = 24  ;;  %s270_s4 = sshll.u32 (!%p124_p3), %s539_s3, 4 }
  0x1b   : > { %s130_s5 = scalar_lea.sflag (!%p124_p3), [#allocation3], %s539_s3  ;;  %s133_s12 = scalar_lea.vmem (!%p124_p3), [#allocation2], %s270_s4 }
  0x1f   : > { %424 = dma.done.wait (%p512_p8), %s130_s5, 256  }
  0x20   : > { %426 = vsyncadd (%p512_p8), %s130_s5, 4294967040  ;;  %s278_s13 = sshll.u32 %s445_s9, 4  ;;  %s152_s22 = scalar_lea.vmem [#allocation5], %s270_s4  ;;  %v155_v0 = vld [vmem:[%s133_s12] sm:$0xff]  ;;  %v156_v1 = vld [vmem:[%s133_s12 + $0x8] sm:$0xff] }
  0x21   : > { %s173_s17 = scalar_lea.hbm %s586_s1, %s278_s13  ;;  %s175_s23 = sshll.u32 %s152_s22, 4  ;;  %157 = vst [vmem:[%s152_s22] sm:$0xff] %v155_v0  ;;  %s176_s23 = int_to_ptr.vmem [resolvable:$true] %s175_s23 }
  0x22   : > { %s177_s24 = sshll.u32 %s173_s17, 4  ;;  %158 = vst [vmem:[%s152_s22 + $0x8] sm:$0xff] %v156_v1  ;;  %s160_s25 = scalar_lea.sflag [#allocation4], %s539_s3  ;;  %s178_s24 = int_to_ptr.hbm [resolvable:$true] %s177_s24 }
  0x23   : > { %s385_s18 = sshra.s32 %s178_s24, 4  ;;  %s391_s28 = scalar_lea.hbm %s586_s1, 32  ;;  %s386_s18 = int_to_ptr.hbm [resolvable:$true] %s385_s18 }
  0x24   : > { %s387_s26 = scalar_lea.hbm %s386_s18, 16  ;;  %p392_p7 = scmp.lt.s32.totalorder %s386_s18, %s586_s1 }
  0x25   : > { %p388_p4 = scmp.ne.s32.totalorder %s386_s18, %s387_s26  ;;  %p393_p8 = scmp.lt.s32.totalorder %s391_s28, %s387_s26 }
  0x27   : > { %p389_p5 = pnand %p388_p4, %p516_p9  ;;  %p394_p10 = por %p393_p8, %p392_p7 }
  0x29   : > { %p390_p6 = pneg %p389_p5 }
  0x2b   : > { %p395_p13 = pnand %p394_p10, %p390_p6 }
  0x2d   : > { %398 = shalt.err (!%p395_p13)
}
  0x2e   : > { %281 = dma.vmem_to_hbm [thread:$0]  (%p516_p9), %s176_s23, 256, %s178_s24, %s160_s25  }
  0x2f PF: > { %s189_s2 = sand.u32 1, %s433_s6   ;;  %p288_p0 = pnand %p265_p12, %p523_p11 }
  0x30   : > { %s190_s3 = scalar_lea.sflag [#allocation4], %s189_s2 }
  0x31   : > { %p289_p1 = pneg %p288_p0 }
  0x33   : > { %428 = dma.done.wait (%p289_p1), %s190_s3, 256  }
  0x34   : > { %430 = vsyncadd (%p289_p1), %s190_s3, 4294967040  ;;  %s17_s11 = sadd.s32 1, %s453_s11   ;;  %s591_s6 = smov %s437_s7 }
  0x35   : > { %p14_p2 = scmp.ge.s32.totalorder %s17_s11, 4   ;;  %s592_s7 = smov %s441_s8 }
  0x36   : > { %s593_s8 = smov %s521_s20  ;;  %s594_s9 = smov %s449_s10 }
  0x37   : > { %s595_s10 = smov %s597_s14  ;;  %16 = sbr.rel (!%p14_p2) target bundleno = 6 (0x6), region = 69 }
  0x3c   :  { %196 = vsyncpa [#allocation3], 1 }
  0x3d   :  { %198 = vsyncpa [#allocation3 + $0x1], 1 }
  0x3e   :  { %199 = vsyncpa [#allocation4], 1 }
  0x3f   :  { %201 = vsyncpa [#allocation4 + $0x1], 1 }

</bundles_post_ra>
